<compile_context>
chip_gen: v6e
topology: v6e:2x2x1
jax: 0.10.0
libtpu: 0.0.40
codegen_flags: <defaults>
</compile_context>

<pallas_src>
import jax
import jax.numpy as jnp
from jax.experimental import pallas as pl
from jax.experimental.pallas import tpu as pltpu

LANE = 128


def _round_up(x, m):
    return ((x + m - 1) // m) * m


def _device_kind():
    try:
        return jax.devices()[0].device_kind.lower()
    except Exception:
        return ""


def _vmem_capacity_bytes(kind):
    try:
        cap = int(pltpu.get_tpu_info().vmem_capacity_bytes)
        if cap > 0:
            return cap
    except Exception:
        pass
    # Fallback: v7x has 64 MiB VMEM per TensorCore; v5e/v6e have 128 MiB.
    return (64 << 20) if "v7" in kind else (128 << 20)


def _make_mlp_kernel(num_layers, tanh_flags, mxu_dtype, act_dtype):
    """Fused MLP kernel: num_layers linear layers; tanh where tanh_flags[i]."""

    def kernel(x_ref, *refs):
        o_ref = refs[-1]
        wb = refs[:-1]  # (w0, b0, w1, b1, ..., w_last, b_last)
        h = x_ref[...]
        for li in range(num_layers):
            w = wb[2 * li][...]
            b = wb[2 * li + 1][...]
            # MXU matmul in mxu_dtype (bf16 fast path), f32 accumulate + bias.
            acc = jnp.dot(h.astype(mxu_dtype), w, preferred_element_type=jnp.float32)
            acc = acc + b
            if tanh_flags[li]:
                # bf16 tanh on v6e/v7x (EUP, not MXU, saturates first at 128-wide
                # layers); act_dtype stays f32 on v5e and in the full-f32 path.
                h = jnp.tanh(acc.astype(act_dtype))
            else:
                h = acc
        o_ref[...] = h.astype(o_ref.dtype)

    return kernel


def _fused_group_call(x_p, w_ps, b_ps, tanh_flags, out_dt, block_rows,
                      mxu_dtype, act_dtype, vmem_limit_single, vmem_limit_double):
    """One pallas_call over a consecutive group of layers (weights VMEM-resident)."""
    n_pad, pin = x_p.shape
    pout = w_ps[-1].shape[1]
    num_layers = len(w_ps)
    grid = (n_pad // block_rows,)

    def build(single_buffer_weights):
        in_specs = [pl.BlockSpec((block_rows, pin), lambda i: (i, 0))]
        for li in range(num_layers):
            w_shape = w_ps[li].shape
            if single_buffer_weights:
                # Constant index_map -> block never changes; one buffer is enough.
                w_spec = pl.BlockSpec(w_shape, lambda i: (0, 0),
                                      pipeline_mode=pl.Buffered(1))
                b_spec = pl.BlockSpec((1, w_shape[1]), lambda i: (0, 0),
                                      pipeline_mode=pl.Buffered(1))
            else:
                w_spec = pl.BlockSpec(w_shape, lambda i: (0, 0))
                b_spec = pl.BlockSpec((1, w_shape[1]), lambda i: (0, 0))
            in_specs.extend([w_spec, b_spec])
        out_spec = pl.BlockSpec((block_rows, pout), lambda i: (i, 0))  # lane-dense
        vmem_limit = vmem_limit_single if single_buffer_weights else vmem_limit_double
        return pl.pallas_call(
            _make_mlp_kernel(num_layers, tanh_flags, mxu_dtype, act_dtype),
            out_shape=jax.ShapeDtypeStruct((n_pad, pout), out_dt),
            grid_spec=pltpu.PrefetchScalarGridSpec(
                num_scalar_prefetch=0,
                grid=grid,
                in_specs=in_specs,
                out_specs=out_spec,
            ),
            compiler_params=pltpu.CompilerParams(
                dimension_semantics=("parallel",),
                vmem_limit_bytes=int(vmem_limit),
            ),
        )

    flat = []
    for w, b in zip(w_ps, b_ps):
        flat.extend([w, b])
    try:
        return build(True)(x_p, *flat)
    except Exception:
        # pl.Buffered(1) rejected on this jax version/backend: fall back to the
        # default double-buffered weights with a correspondingly larger VMEM budget.
        return build(False)(x_p, *flat)


def mlp_forward(x, weights, biases, *, row_tile=512, use_bf16_matmul=True,
                out_dtype=None):
    """Run the fused MLP Pallas kernel.

    x:       (N, input_dim) float32
    weights: list of arrays, weights[i] has shape (dims[i], dims[i+1])  (x @ W layout)
    biases:  list of arrays, biases[i] has shape (1, dims[i+1])
    Hidden layers (all but the last) get tanh; the last layer is linear.
    """
    n, d_in = x.shape
    dims = [d_in] + [w.shape[1] for w in weights]
    d_out = dims[-1]
    num_layers = len(weights)
    out_dtype = x.dtype if out_dtype is None else out_dtype

    kind = _device_kind()
    is_v5 = "v5" in kind
    multi_tc = "v7" in kind  # v7x: 2 TensorCores per chip
    vmem_phys = _vmem_capacity_bytes(kind)
    # Generation-aware cap with headroom for compiler-internal scratch:
    # ~52 MiB on v7x (64 MiB physical), ~105 MiB on v5e/v6e (128 MiB physical).
    vmem_cap = min(int(vmem_phys * 0.82), vmem_phys - (8 << 20))

    mxu_dtype = jnp.bfloat16 if use_bf16_matmul else x.dtype
    act_dtype = jnp.bfloat16 if (use_bf16_matmul and not is_v5) else jnp.float32
    stream_dtype = jnp.bfloat16 if use_bf16_matmul else x.dtype
    mxu_isz = jnp.dtype(mxu_dtype).itemsize
    stream_isz = jnp.dtype(stream_dtype).itemsize

    # ---- pad feature dims to lane multiples (128) -------------------------------
    pdims = [_round_up(d, LANE) for d in dims]

    # ---- group consecutive layers so each group's weights fit in VMEM -----------
    weight_budget = max(vmem_cap - (16 << 20), 8 << 20)
    layer_bytes = [pdims[i] * pdims[i + 1] * mxu_isz + pdims[i + 1] * 4
                   for i in range(num_layers)]
    groups, cur, cur_bytes = [], [], 0
    for i in range(num_layers):
        # TODO(synk): a single layer wider than the VMEM budget would need an inner
        # K/N grid axis with an accumulator; not implemented (DFINE MLPs are tiny).
        if cur and cur_bytes + layer_bytes[i] > weight_budget:
            groups.append(cur)
            cur, cur_bytes = [], 0
        cur.append(i)
        cur_bytes += layer_bytes[i]
    groups.append(cur)

    def _per_row_bytes(g):
        pin, pout = pdims[g[0]], pdims[g[-1] + 1]
        pmax = max([pin] + [pdims[i + 1] for i in g])
        # double-buffered streamed in/out tiles + in-kernel h / f32-acc intermediates
        return 2 * pin * stream_isz + 2 * pout * 4 + 8 * pmax

    # ---- pick a row tile (multiple of 256 at the default 512) bounded by VMEM ---
    row_align = 16 if stream_dtype == jnp.bfloat16 else 8
    max_fixed = max(sum(layer_bytes[i] for i in g) for g in groups)
    max_per_row = max(_per_row_bytes(g) for g in groups)
    block_rows = min(_round_up(row_tile, row_align), _round_up(n, row_align))
    while (block_rows > row_align and
           max_fixed + block_rows * max_per_row + (4 << 20) > vmem_cap):
        block_rows = max(row_align, _round_up(block_rows // 2, row_align))
    n_pad = _round_up(n, block_rows)
    # v7x: guarantee >=2 grid steps so ("parallel",) shards across both TensorCores.
    if multi_tc and n_pad // block_rows == 1:
        half = _round_up(max(block_rows // 2, row_align), row_align)
        if half < block_rows and n > half:
            block_rows = half
            n_pad = _round_up(n, block_rows)

    # ---- padded operands (streamed input already in bf16 -> half the HBM traffic)
    h_p = jnp.zeros((n_pad, pdims[0]), stream_dtype).at[:n, :d_in].set(
        x.astype(stream_dtype))
    w_p, b_p = [], []
    for i in range(num_layers):
        w_p.append(jnp.zeros((pdims[i], pdims[i + 1]), mxu_dtype)
                   .at[:dims[i], :dims[i + 1]].set(weights[i].astype(mxu_dtype)))
        b_p.append(jnp.zeros((1, pdims[i + 1]), jnp.float32)
                   .at[:, :dims[i + 1]].set(biases[i].astype(jnp.float32)))

    # ---- run the (usually single) group of fused layers --------------------------
    for gi, g in enumerate(groups):
        last_group = gi == len(groups) - 1
        g_out_dt = out_dtype if last_group else stream_dtype
        tanh_flags = [i < num_layers - 1 for i in g]
        fixed = sum(layer_bytes[i] for i in g)
        pr = _per_row_bytes(g)
        vmem_single = min(max(fixed + block_rows * pr + (4 << 20), 32 << 20), vmem_cap)
        vmem_double = min(max(2 * fixed + block_rows * pr + (4 << 20), 32 << 20), vmem_cap)
        h_p = _fused_group_call(
            h_p, [w_p[i] for i in g], [b_p[i] for i in g], tanh_flags, g_out_dt,
            block_rows, mxu_dtype, act_dtype, vmem_single, vmem_double)

    return h_p[:n, :d_out].astype(out_dtype)


def make_params(key, input_dim, layer_list, output_dim):
    """Deterministic parameters matching MLP.__init__ shapes (xavier_normal analogue)."""
    dims = [input_dim] + list(layer_list) + [output_dim]
    keys = jax.random.split(key, 2 * (len(dims) - 1))
    weights, biases = [], []
    for i in range(len(dims) - 1):
        fan_in, fan_out = dims[i], dims[i + 1]
        std = (2.0 / (fan_in + fan_out)) ** 0.5
        w_pt = std * jax.random.normal(keys[2 * i], (fan_out, fan_in), dtype=jnp.float32)
        b = 0.01 * jax.random.normal(keys[2 * i + 1], (1, fan_out), dtype=jnp.float32)
        weights.append(w_pt.T)  # store as (in, out) so the kernel computes x @ W
        biases.append(b)
    return weights, biases


def mlp_reference(x, weights, biases):
    """Plain-JAX reference of the same forward pass."""
    h = x
    for w, b in zip(weights[:-1], biases[:-1]):
        h = jnp.tanh(h @ w + b)
    return h @ weights[-1] + biases[-1]


if __name__ == "__main__":
    key = jax.random.PRNGKey(0)
    k_param, k_x = jax.random.split(key)

    # Small shapes consistent with the module's forward:
    # inp shape (num_seq * num_steps, input_dim) with num_seq=2, num_steps=8.
    num_seq, num_steps = 2, 8
    input_dim, layer_list, output_dim = 16, [32, 32], 8

    weights, biases = make_params(k_param, input_dim, layer_list, output_dim)
    x = jax.random.normal(k_x, (num_seq * num_steps, input_dim), dtype=jnp.float32)

    ref = mlp_reference(x, weights, biases)

    # Fast path: bf16 streaming + bf16 MXU (+ bf16 tanh on v6e/v7x), f32 accumulate.
    out = jax.block_until_ready(mlp_forward(x, weights, biases, use_bf16_matmul=True))
    assert out.shape == (num_seq * num_steps, output_dim)
    assert jnp.allclose(out, ref, atol=3e-2, rtol=3e-2), "bf16 path mismatch vs reference"

    # Full-f32 path: tight match to reference.
    out_f32 = jax.block_until_ready(mlp_forward(x, weights, biases, use_bf16_matmul=False))
    assert jnp.allclose(out_f32, ref, atol=1e-4, rtol=1e-4), "f32 path mismatch vs reference"

    print("KERNEL_OK")
</pallas_src>

<mosaic_0001>
module attributes {stable_mosaic.version = 11 : i64} {
  func.func @kernel(%arg0: i32, %arg1: memref<16x128xbf16, #tpu.memory_space<vmem>>, %arg2: memref<128x128xbf16, #tpu.memory_space<vmem>>, %arg3: memref<1x128xf32, #tpu.memory_space<vmem>>, %arg4: memref<128x128xbf16, #tpu.memory_space<vmem>>, %arg5: memref<1x128xf32, #tpu.memory_space<vmem>>, %arg6: memref<128x128xbf16, #tpu.memory_space<vmem>>, %arg7: memref<1x128xf32, #tpu.memory_space<vmem>>, %arg8: memref<16x128xf32, #tpu.memory_space<vmem>>) attributes {dimension_semantics = [#tpu.dimension_semantics<parallel>], iteration_bounds = array<i64: 1>, scalar_prefetch = 0 : i64, scratch_operands = 0 : i64, tpu.core_type = #tpu.core_type<tc>, window_params = [{transform_indices = @transform_0, window_bounds = array<i64: 16, 128>}, {pipeline_mode = #tpu.pipeline_mode<synchronous>, transform_indices = @transform_1, window_bounds = array<i64: 128, 128>}, {pipeline_mode = #tpu.pipeline_mode<synchronous>, transform_indices = @transform_2, window_bounds = array<i64: 1, 128>}, {pipeline_mode = #tpu.pipeline_mode<synchronous>, transform_indices = @transform_3, window_bounds = array<i64: 128, 128>}, {pipeline_mode = #tpu.pipeline_mode<synchronous>, transform_indices = @transform_4, window_bounds = array<i64: 1, 128>}, {pipeline_mode = #tpu.pipeline_mode<synchronous>, transform_indices = @transform_5, window_bounds = array<i64: 128, 128>}, {pipeline_mode = #tpu.pipeline_mode<synchronous>, transform_indices = @transform_6, window_bounds = array<i64: 1, 128>}, {transform_indices = @transform_7, window_bounds = array<i64: 16, 128>}]} {
    %c0 = arith.constant 0 : index
    %c0_0 = arith.constant 0 : index
    %0 = vector.load %arg1[%c0, %c0_0] : memref<16x128xbf16, #tpu.memory_space<vmem>>, vector<16x128xbf16>
    %c0_1 = arith.constant 0 : index
    %c0_2 = arith.constant 0 : index
    %1 = vector.load %arg2[%c0_1, %c0_2] : memref<128x128xbf16, #tpu.memory_space<vmem>>, vector<128x128xbf16>
    %c0_3 = arith.constant 0 : index
    %c0_4 = arith.constant 0 : index
    %2 = vector.load %arg3[%c0_3, %c0_4] : memref<1x128xf32, #tpu.memory_space<vmem>>, vector<1x128xf32>
    %cst = arith.constant dense<0.000000e+00> : vector<16x128xf32>
    %3 = tpu.matmul %0, %1, %cst {dimension_numbers = #tpu.dot_dimension_numbers<[1], [0], [0], [1], [0, 0, 1, 1], [], []>} : vector<16x128xbf16>, vector<128x128xbf16>, vector<16x128xf32> -> vector<16x128xf32>
    %4 = vector.broadcast %2 : vector<1x128xf32> to vector<16x128xf32>
    %5 = arith.addf %3, %4 : vector<16x128xf32>
    %6 = arith.truncf %5 : vector<16x128xf32> to vector<16x128xbf16>
    %7 = math.tanh %6 : vector<16x128xbf16>
    %c0_5 = arith.constant 0 : index
    %c0_6 = arith.constant 0 : index
    %8 = vector.load %arg4[%c0_5, %c0_6] : memref<128x128xbf16, #tpu.memory_space<vmem>>, vector<128x128xbf16>
    %c0_7 = arith.constant 0 : index
    %c0_8 = arith.constant 0 : index
    %9 = vector.load %arg5[%c0_7, %c0_8] : memref<1x128xf32, #tpu.memory_space<vmem>>, vector<1x128xf32>
    %cst_9 = arith.constant dense<0.000000e+00> : vector<16x128xf32>
    %10 = tpu.matmul %7, %8, %cst_9 {dimension_numbers = #tpu.dot_dimension_numbers<[1], [0], [0], [1], [0, 0, 1, 1], [], []>} : vector<16x128xbf16>, vector<128x128xbf16>, vector<16x128xf32> -> vector<16x128xf32>
    %11 = vector.broadcast %9 : vector<1x128xf32> to vector<16x128xf32>
    %12 = arith.addf %10, %11 : vector<16x128xf32>
    %13 = arith.truncf %12 : vector<16x128xf32> to vector<16x128xbf16>
    %14 = math.tanh %13 : vector<16x128xbf16>
    %c0_10 = arith.constant 0 : index
    %c0_11 = arith.constant 0 : index
    %15 = vector.load %arg6[%c0_10, %c0_11] : memref<128x128xbf16, #tpu.memory_space<vmem>>, vector<128x128xbf16>
    %c0_12 = arith.constant 0 : index
    %c0_13 = arith.constant 0 : index
    %16 = vector.load %arg7[%c0_12, %c0_13] : memref<1x128xf32, #tpu.memory_space<vmem>>, vector<1x128xf32>
    %cst_14 = arith.constant dense<0.000000e+00> : vector<16x128xf32>
    %17 = tpu.matmul %14, %15, %cst_14 {dimension_numbers = #tpu.dot_dimension_numbers<[1], [0], [0], [1], [0, 0, 1, 1], [], []>} : vector<16x128xbf16>, vector<128x128xbf16>, vector<16x128xf32> -> vector<16x128xf32>
    %18 = vector.broadcast %16 : vector<1x128xf32> to vector<16x128xf32>
    %19 = arith.addf %17, %18 : vector<16x128xf32>
    %c0_15 = arith.constant 0 : index
    %c0_16 = arith.constant 0 : index
    %20 = vector.load %arg8[%c0_15, %c0_16] : memref<16x128xf32, #tpu.memory_space<vmem>>, vector<16x128xf32>
    tpu.vector_store %arg8[%c0_15, %c0_16], %19 {strides = array<i32>} : memref<16x128xf32, #tpu.memory_space<vmem>>, vector<16x128xf32>,
    return
  }
  func.func @transform_0(%arg0: i32) -> (i32, i32) {
    %c0_i32 = arith.constant 0 : i32
    %c0_i32_0 = arith.constant 0 : i32
    return %arg0, %c0_i32 : i32, i32
  }
  func.func @transform_1(%arg0: i32) -> (i32, i32) {
    %c0_i32 = arith.constant 0 : i32
    %c0_i32_0 = arith.constant 0 : i32
    %c0_i32_1 = arith.constant 0 : i32
    return %c0_i32, %c0_i32_0 : i32, i32
  }
  func.func @transform_2(%arg0: i32) -> (i32, i32) {
    %c0_i32 = arith.constant 0 : i32
    %c0_i32_0 = arith.constant 0 : i32
    %c0_i32_1 = arith.constant 0 : i32
    return %c0_i32, %c0_i32_0 : i32, i32
  }
  func.func @transform_3(%arg0: i32) -> (i32, i32) {
    %c0_i32 = arith.constant 0 : i32
    %c0_i32_0 = arith.constant 0 : i32
    %c0_i32_1 = arith.constant 0 : i32
    return %c0_i32, %c0_i32_0 : i32, i32
  }
  func.func @transform_4(%arg0: i32) -> (i32, i32) {
    %c0_i32 = arith.constant 0 : i32
    %c0_i32_0 = arith.constant 0 : i32
    %c0_i32_1 = arith.constant 0 : i32
    return %c0_i32, %c0_i32_0 : i32, i32
  }
  func.func @transform_5(%arg0: i32) -> (i32, i32) {
    %c0_i32 = arith.constant 0 : i32
    %c0_i32_0 = arith.constant 0 : i32
    %c0_i32_1 = arith.constant 0 : i32
    return %c0_i32, %c0_i32_0 : i32, i32
  }
  func.func @transform_6(%arg0: i32) -> (i32, i32) {
    %c0_i32 = arith.constant 0 : i32
    %c0_i32_0 = arith.constant 0 : i32
    %c0_i32_1 = arith.constant 0 : i32
    return %c0_i32, %c0_i32_0 : i32, i32
  }
  func.func @transform_7(%arg0: i32) -> (i32, i32) {
    %c0_i32 = arith.constant 0 : i32
    %c0_i32_0 = arith.constant 0 : i32
    return %arg0, %c0_i32 : i32, i32
  }
}

module attributes {stable_mosaic.version = 11 : i64} {
  func.func @kernel(%arg0: i32, %arg1: memref<16x128xbf16, #tpu.memory_space<vmem>>, %arg2: memref<128x128xbf16, #tpu.memory_space<vmem>>, %arg3: memref<1x128xf32, #tpu.memory_space<vmem>>, %arg4: memref<128x128xbf16, #tpu.memory_space<vmem>>, %arg5: memref<1x128xf32, #tpu.memory_space<vmem>>, %arg6: memref<128x128xbf16, #tpu.memory_space<vmem>>, %arg7: memref<1x128xf32, #tpu.memory_space<vmem>>, %arg8: memref<16x128xf32, #tpu.memory_space<vmem>>) attributes {dimension_semantics = [#tpu.dimension_semantics<parallel>], iteration_bounds = array<i64: 1>, scalar_prefetch = 0 : i64, scratch_operands = 0 : i64, tpu.core_type = #tpu.core_type<tc>, window_params = [{transform_indices = @transform_0, window_bounds = array<i64: 16, 128>}, {pipeline_mode = #tpu.pipeline_mode<synchronous>, transform_indices = @transform_1, window_bounds = array<i64: 128, 128>}, {pipeline_mode = #tpu.pipeline_mode<synchronous>, transform_indices = @transform_2, window_bounds = array<i64: 1, 128>}, {pipeline_mode = #tpu.pipeline_mode<synchronous>, transform_indices = @transform_3, window_bounds = array<i64: 128, 128>}, {pipeline_mode = #tpu.pipeline_mode<synchronous>, transform_indices = @transform_4, window_bounds = array<i64: 1, 128>}, {pipeline_mode = #tpu.pipeline_mode<synchronous>, transform_indices = @transform_5, window_bounds = array<i64: 128, 128>}, {pipeline_mode = #tpu.pipeline_mode<synchronous>, transform_indices = @transform_6, window_bounds = array<i64: 1, 128>}, {transform_indices = @transform_7, window_bounds = array<i64: 16, 128>}]} {
    %c0 = arith.constant 0 : index
    %c0_0 = arith.constant 0 : index
    %0 = vector.load %arg1[%c0, %c0_0] : memref<16x128xbf16, #tpu.memory_space<vmem>>, vector<16x128xbf16>
    %c0_1 = arith.constant 0 : index
    %c0_2 = arith.constant 0 : index
    %1 = vector.load %arg2[%c0_1, %c0_2] : memref<128x128xbf16, #tpu.memory_space<vmem>>, vector<128x128xbf16>
    %c0_3 = arith.constant 0 : index
    %c0_4 = arith.constant 0 : index
    %2 = vector.load %arg3[%c0_3, %c0_4] : memref<1x128xf32, #tpu.memory_space<vmem>>, vector<1x128xf32>
    %cst = arith.constant dense<0.000000e+00> : vector<16x128xf32>
    %3 = tpu.matmul %0, %1, %cst {dimension_numbers = #tpu.dot_dimension_numbers<[1], [0], [0], [1], [0, 0, 1, 1], [], []>} : vector<16x128xbf16>, vector<128x128xbf16>, vector<16x128xf32> -> vector<16x128xf32>
    %4 = vector.broadcast %2 : vector<1x128xf32> to vector<16x128xf32>
    %5 = arith.addf %3, %4 : vector<16x128xf32>
    %6 = arith.truncf %5 : vector<16x128xf32> to vector<16x128xbf16>
    %7 = math.tanh %6 : vector<16x128xbf16>
    %c0_5 = arith.constant 0 : index
    %c0_6 = arith.constant 0 : index
    %8 = vector.load %arg4[%c0_5, %c0_6] : memref<128x128xbf16, #tpu.memory_space<vmem>>, vector<128x128xbf16>
    %c0_7 = arith.constant 0 : index
    %c0_8 = arith.constant 0 : index
    %9 = vector.load %arg5[%c0_7, %c0_8] : memref<1x128xf32, #tpu.memory_space<vmem>>, vector<1x128xf32>
    %cst_9 = arith.constant dense<0.000000e+00> : vector<16x128xf32>
    %10 = tpu.matmul %7, %8, %cst_9 {dimension_numbers = #tpu.dot_dimension_numbers<[1], [0], [0], [1], [0, 0, 1, 1], [], []>} : vector<16x128xbf16>, vector<128x128xbf16>, vector<16x128xf32> -> vector<16x128xf32>
    %11 = vector.broadcast %9 : vector<1x128xf32> to vector<16x128xf32>
    %12 = arith.addf %10, %11 : vector<16x128xf32>
    %13 = arith.truncf %12 : vector<16x128xf32> to vector<16x128xbf16>
    %14 = math.tanh %13 : vector<16x128xbf16>
    %c0_10 = arith.constant 0 : index
    %c0_11 = arith.constant 0 : index
    %15 = vector.load %arg6[%c0_10, %c0_11] : memref<128x128xbf16, #tpu.memory_space<vmem>>, vector<128x128xbf16>
    %c0_12 = arith.constant 0 : index
    %c0_13 = arith.constant 0 : index
    %16 = vector.load %arg7[%c0_12, %c0_13] : memref<1x128xf32, #tpu.memory_space<vmem>>, vector<1x128xf32>
    %cst_14 = arith.constant dense<0.000000e+00> : vector<16x128xf32>
    %17 = tpu.matmul %14, %15, %cst_14 {dimension_numbers = #tpu.dot_dimension_numbers<[1], [0], [0], [1], [0, 0, 1, 1], [], []>} : vector<16x128xbf16>, vector<128x128xbf16>, vector<16x128xf32> -> vector<16x128xf32>
    %18 = vector.broadcast %16 : vector<1x128xf32> to vector<16x128xf32>
    %19 = arith.addf %17, %18 : vector<16x128xf32>
    %c0_15 = arith.constant 0 : index
    %c0_16 = arith.constant 0 : index
    %20 = vector.load %arg8[%c0_15, %c0_16] : memref<16x128xf32, #tpu.memory_space<vmem>>, vector<16x128xf32>
    tpu.vector_store %arg8[%c0_15, %c0_16], %19 {strides = array<i32>} : memref<16x128xf32, #tpu.memory_space<vmem>>, vector<16x128xf32>,
    return
  }
  func.func @transform_0(%arg0: i32) -> (i32, i32) {
    %c0_i32 = arith.constant 0 : i32
    %c0_i32_0 = arith.constant 0 : i32
    return %arg0, %c0_i32 : i32, i32
  }
  func.func @transform_1(%arg0: i32) -> (i32, i32) {
    %c0_i32 = arith.constant 0 : i32
    %c0_i32_0 = arith.constant 0 : i32
    %c0_i32_1 = arith.constant 0 : i32
    return %c0_i32, %c0_i32_0 : i32, i32
  }
  func.func @transform_2(%arg0: i32) -> (i32, i32) {
    %c0_i32 = arith.constant 0 : i32
    %c0_i32_0 = arith.constant 0 : i32
    %c0_i32_1 = arith.constant 0 : i32
    return %c0_i32, %c0_i32_0 : i32, i32
  }
  func.func @transform_3(%arg0: i32) -> (i32, i32) {
    %c0_i32 = arith.constant 0 : i32
    %c0_i32_0 = arith.constant 0 : i32
    %c0_i32_1 = arith.constant 0 : i32
    return %c0_i32, %c0_i32_0 : i32, i32
  }
  func.func @transform_4(%arg0: i32) -> (i32, i32) {
    %c0_i32 = arith.constant 0 : i32
    %c0_i32_0 = arith.constant 0 : i32
    %c0_i32_1 = arith.constant 0 : i32
    return %c0_i32, %c0_i32_0 : i32, i32
  }
  func.func @transform_5(%arg0: i32) -> (i32, i32) {
    %c0_i32 = arith.constant 0 : i32
    %c0_i32_0 = arith.constant 0 : i32
    %c0_i32_1 = arith.constant 0 : i32
    return %c0_i32, %c0_i32_0 : i32, i32
  }
  func.func @transform_6(%arg0: i32) -> (i32, i32) {
    %c0_i32 = arith.constant 0 : i32
    %c0_i32_0 = arith.constant 0 : i32
    %c0_i32_1 = arith.constant 0 : i32
    return %c0_i32, %c0_i32_0 : i32, i32
  }
  func.func @transform_7(%arg0: i32) -> (i32, i32) {
    %c0_i32 = arith.constant 0 : i32
    %c0_i32_0 = arith.constant 0 : i32
    return %arg0, %c0_i32 : i32, i32
  }
}

</mosaic_0001>

<bundles_post_ra>
// kernel: tpu_custom_call.1
= control target key start
LH: loop header
LB: loop body
LE: loop exit
PB: predicated region body
PF: predicated region fallthrough
CT: control target
= control target key end

     0   :  { %12 = vsyncpa [#allocation3], 0  ;;  %s832_s0 = inlined_call_operand.hbm [shape: bf16[16,128], index: 0, kind: input, shape index: {}]   ;;  %s833_s1 = inlined_call_operand.hbm [shape: bf16[128,128], index: 1, kind: input, shape index: {}]   ;;  %s834_s2 = inlined_call_operand.vmem [shape: f32[1,128], index: 2, kind: input, shape index: {}]   ;;  %s835_s3 = inlined_call_operand.hbm [shape: bf16[128,128], index: 3, kind: input, shape index: {}]   ;;  %s836_s4 = inlined_call_operand.vmem [shape: f32[1,128], index: 4, kind: input, shape index: {}]   ;;  %s837_s5 = inlined_call_operand.hbm [shape: bf16[128,128], index: 5, kind: input, shape index: {}]   ;;  %s838_s6 = inlined_call_operand.vmem [shape: f32[1,128], index: 6, kind: input, shape index: {}]   ;;  %s839_s7 = inlined_call_operand.hbm [shape: f32[16,128], index: 7, kind: output, shape index: {}]  }
   0x1   :  { %13 = vsyncpa [#allocation6], 0 }
   0x2   :  { %14 = vsyncpa [#allocation9], 0 }
   0x3   :  { %15 = vsyncpa [#allocation4], 0  ;;  %s715_s24 = smov [#allocation5]   ;;  %s716_s26 = smov [#allocation2]  }
   0x4   :  { %s33_s25 = sshll.u32 %s715_s24, 4  ;;  %s21_s27 = sshll.u32 %s716_s26, 4  ;;  %s34_s25 = int_to_ptr.vmem [resolvable:$true] %s33_s25  ;;  %s22_s27 = int_to_ptr.vmem [resolvable:$true] %s21_s27 }
   0x5   :  { %s615_s28 = scalar_lea.vmem %s34_s25, 1024  ;;  %p620_p1 = scmp.lt.s32.totalorder %s34_s25, %s34_s25 }
   0x6   :  { %p616_p0 = scmp.ne.s32.totalorder %s34_s25, %s615_s28  ;;  %p621_p2 = scmp.lt.s32.totalorder %s615_s28, %s615_s28 }
   0x8   :  { %p622_p3 = por %p621_p2, %p620_p1 }
   0xa   :  { %p623_p4 = pnand %p622_p3, %p616_p0 }
   0xc   :  { %626 = shalt.err (!%p623_p4)
}
   0xd   :  { %s717_s29 = smov 64   ;;  %s718_s30 = smov 4  }
   0xe   :  { %39 = dma.hbm_to_vmem [thread:$0]  %s833_s1, 1024, %s34_s25, [#allocation6], %s717_s29, %s717_s29, %s718_s30  }
   0xf   :  { %s635_s10 = scalar_lea.vmem %s22_s27, 128  ;;  %p640_p6 = scmp.lt.s32.totalorder %s22_s27, %s22_s27 }
  0x10   :  { %p636_p5 = scmp.ne.s32.totalorder %s22_s27, %s635_s10  ;;  %p641_p7 = scmp.lt.s32.totalorder %s635_s10, %s635_s10 }
  0x12   :  { %p642_p8 = por %p641_p7, %p640_p6 }
  0x14   :  { %p643_p9 = pnand %p642_p8, %p636_p5 }
  0x16   :  { %646 = shalt.err (!%p643_p9)
}
  0x17   :  { %27 = dma.hbm_to_vmem [thread:$0]  %s832_s0, 128, %s22_s27, [#allocation3], %s717_s29, %s717_s29, %s718_s30  }
  0x18   :  { %s719_s13 = smov [#allocation7]   ;;  %s720_s15 = smov [#allocation8]  }
  0x19   :  { %s47_s14 = sshll.u32 %s719_s13, 4  ;;  %s61_s16 = sshll.u32 %s720_s15, 4  ;;  %s48_s14 = int_to_ptr.vmem [resolvable:$true] %s47_s14  ;;  %s62_s16 = int_to_ptr.vmem [resolvable:$true] %s61_s16 }
  0x1a   :  { %s655_s1 = scalar_lea.vmem %s48_s14, 1024  ;;  %p660_p11 = scmp.lt.s32.totalorder %s48_s14, %s48_s14 }
  0x1b   :  { %p656_p10 = scmp.ne.s32.totalorder %s48_s14, %s655_s1  ;;  %p661_p12 = scmp.lt.s32.totalorder %s655_s1, %s655_s1 }
  0x1d   :  { %p662_p13 = por %p661_p12, %p660_p11 }
  0x1f   :  { %p663_p0 = pnand %p662_p13, %p656_p10 }
  0x21   :  { %666 = shalt.err (!%p663_p0)
}
  0x22   :  { %53 = dma.hbm_to_vmem [thread:$0]  %s835_s3, 1024, %s48_s14, [#allocation6], %s717_s29, %s717_s29, %s718_s30  }
  0x23   :  { %s675_s0 = scalar_lea.vmem %s62_s16, 1024  ;;  %p680_p2 = scmp.lt.s32.totalorder %s62_s16, %s62_s16 }
  0x24   :  { %p676_p1 = scmp.ne.s32.totalorder %s62_s16, %s675_s0  ;;  %p681_p3 = scmp.lt.s32.totalorder %s675_s0, %s675_s0 }
  0x26   :  { %p682_p4 = por %p681_p3, %p680_p2 }
  0x28   :  { %p683_p5 = pnand %p682_p4, %p676_p1 }
  0x2a   :  { %686 = shalt.err (!%p683_p5)
}
  0x2b   :  { %67 = dma.hbm_to_vmem [thread:$0]  %s837_s5, 1024, %s62_s16, [#allocation9], %s717_s29, %s717_s29, %s718_s30  }
  0x2c   :  { %707 = dma.done.wait [#allocation3], 128  }
  0x2d   :  { %708 = vsyncadd [#allocation3], 4294967168 }
  0x2e   :  { %709 = dma.done.wait [#allocation6], 2048  }
  0x2f   :  { %710 = vsyncadd [#allocation6], 4294965248 }
  0x30   :  { %711 = dma.done.wait [#allocation9], 1024  }
  0x31   :  { %712 = vsyncadd [#allocation9], 4294966272  ;;  %v721_v0 = vmov 0.0   ;;  %vm722_vm0 = vmmov 0   ;;  %v578_v1 = vld [vmem:[#allocation5 + $0x38] sm:$0xff]   ;;  %v579_v2 = vld [vmem:[#allocation5 + $0x30] sm:$0xff]  }
  0x32   :  { %507 = vmatprep.subr.bf16.mxu0 %v721_v0  ;;  %523 = vmatprep.mubr.msk.bf16.mxu0 %vm722_vm0, %v721_v0  ;;  %v580_v3 = vld [vmem:[#allocation5 + $0x28] sm:$0xff]   ;;  %v587_v4 = vld [vmem:[#allocation7 + $0x38] sm:$0xff]   ;;  %v581_v5 = vld [vmem:[#allocation5 + $0x20] sm:$0xff]   ;;  %s723_s24 = smov [#allocation10]  }
  0x33   :  { %527 = vmatprep.subr.bf16.mxu1 %v721_v0  ;;  %543 = vmatprep.mubr.msk.bf16.mxu1 %vm722_vm0, %v721_v0  ;;  %v588_v6 = vld [vmem:[#allocation7 + $0x30] sm:$0xff]   ;;  %v582_v7 = vld [vmem:[#allocation5 + $0x18] sm:$0xff]   ;;  %v584_v9 = vld [vmem:[#allocation5 + $0x8] sm:$0xff]   ;;  %s438_s25 = sshll.u32 %s723_s24, 4  ;;  %s439_s25 = int_to_ptr.vmem [resolvable:$true] %s438_s25 }
  0x34   :  { %508 = vmatpush3.bf16.msra.mxu0 %v578_v1  ;;  %528 = vmatpush3.bf16.msra.mxu1 %v587_v4  ;;  %v583_v8 = vld [vmem:[#allocation5 + $0x10] sm:$0xff]   ;;  %v585_v10 = vld [vmem:[#allocation5] sm:$0xff]   ;;  %v586_v11 = vld [vmem:[#allocation2] sm:$0xff]   ;;  %p692_p7 = scmp.lt.s32.totalorder %s439_s25, %s439_s25 }
  0x35   :  { %509 = vmatprep.subr.bf16.mxu0 %v721_v0  ;;  %529 = vmatprep.subr.bf16.mxu1 %v721_v0  ;;  %v589_v12 = vld [vmem:[#allocation7 + $0x28] sm:$0xff]   ;;  %v590_v13 = vld [vmem:[#allocation7 + $0x20] sm:$0xff]   ;;  %v591_v14 = vld [vmem:[#allocation7 + $0x18] sm:$0xff]  }
  0x36   :  { %v592_v15 = vld [vmem:[#allocation7 + $0x10] sm:$0xff]   ;;  %v593_v16 = vld [vmem:[#allocation7 + $0x8] sm:$0xff]   ;;  %v594_v17 = vld [vmem:[#allocation7] sm:$0xff]  }
  0x37   :  { %v595_v18 = vld [vmem:[#allocation8 + $0x38] sm:$0xff]   ;;  %v596_v19 = vld [vmem:[#allocation8 + $0x30] sm:$0xff]   ;;  %v597_v29 = vld [vmem:[#allocation8 + $0x28] sm:$0xff]  }
  0x38   :  { %510 = vmatpush3.bf16.msra.mxu0 %v579_v2  ;;  %530 = vmatpush3.bf16.msra.mxu1 %v588_v6  ;;  %v452_v21 = vld [vmem:[%s834_s2] ss:$0 sm:$0xff]  ;;  %v598_v30 = vld [vmem:[#allocation8 + $0x20] sm:$0xff]   ;;  %v600_v32 = vld [vmem:[#allocation8 + $0x10] sm:$0xff]  }
  0x39   :  { %511 = vmatprep.subr.bf16.mxu0 %v721_v0  ;;  %531 = vmatprep.subr.bf16.mxu1 %v721_v0  ;;  %v599_v31 = vld [vmem:[#allocation8 + $0x18] sm:$0xff]   ;;  %v601_v33 = vld [vmem:[#allocation8 + $0x8] sm:$0xff]   ;;  %v602_v34 = vld [vmem:[#allocation8] sm:$0xff]  }
  0x3a   :  { %v462_v36 = vld [vmem:[%s836_s4] ss:$0 sm:$0xff]  ;;  %s687_s4 = scalar_lea.vmem %s439_s25, 256 }
  0x3b   :  { %v471_v44 = vld [vmem:[%s838_s6] ss:$0 sm:$0xff]  ;;  %p688_p6 = scmp.ne.s32.totalorder %s439_s25, %s687_s4  ;;  %p693_p8 = scmp.lt.s32.totalorder %s687_s4, %s687_s4 }
  0x3c   :  { %512 = vmatpush3.bf16.msra.mxu0 %v580_v3  ;;  %532 = vmatpush3.bf16.msra.mxu1 %v589_v12 }
  0x3d   :  { %513 = vmatprep.subr.bf16.mxu0 %v721_v0  ;;  %533 = vmatprep.subr.bf16.mxu1 %v721_v0  ;;  %p694_p9 = por %p693_p8, %p692_p7 }
  0x3f   :  { %p695_p10 = pnand %p694_p9, %p688_p6 }
  0x40   :  { %514 = vmatpush3.bf16.msra.mxu0 %v581_v5  ;;  %534 = vmatpush3.bf16.msra.mxu1 %v590_v13 }
  0x41   :  { %515 = vmatprep.subr.bf16.mxu0 %v721_v0  ;;  %535 = vmatprep.subr.bf16.mxu1 %v721_v0 }
  0x44   :  { %516 = vmatpush3.bf16.msra.mxu0 %v582_v7  ;;  %536 = vmatpush3.bf16.msra.mxu1 %v591_v14 }
  0x45   :  { %517 = vmatprep.subr.bf16.mxu0 %v721_v0  ;;  %537 = vmatprep.subr.bf16.mxu1 %v721_v0 }
  0x48   :  { %518 = vmatpush3.bf16.msra.mxu0 %v583_v8  ;;  %538 = vmatpush3.bf16.msra.mxu1 %v592_v15 }
  0x49   :  { %519 = vmatprep.subr.bf16.mxu0 %v721_v0  ;;  %539 = vmatprep.subr.bf16.mxu1 %v721_v0 }
  0x4c   :  { %520 = vmatpush3.bf16.msra.mxu0 %v584_v9  ;;  %540 = vmatpush3.bf16.msra.mxu1 %v593_v16 }
  0x4d   :  { %521 = vmatprep.subr.bf16.mxu0 %v721_v0  ;;  %541 = vmatprep.subr.bf16.mxu1 %v721_v0 }
  0x50   :  { %522 = vmatpush3.bf16.msra.mxu0 %v585_v10  ;;  %542 = vmatpush3.bf16.msra.mxu1 %v594_v17 }
  0x51   :  { %547 = vmatprep.subr.bf16.mxu0 %v721_v0 }
  0x53   :  { %524 = vmatmul.mubr.bf16.vlgmr.msra.gmra.mxu0 %v586_v11 }
  0x54   :  { %563 = vmatprep.mubr.msk.bf16.mxu0 %vm722_vm0, %v721_v0  ;;  %548 = vmatpush3.bf16.msra.mxu0 %v595_v18 }
  0x55   :  { %549 = vmatprep.subr.bf16.mxu0 %v721_v0 }
  0x58   :  { %550 = vmatpush3.bf16.msra.mxu0 %v596_v19 }
  0x59   :  { %551 = vmatprep.subr.bf16.mxu0 %v721_v0 }
  0x5c   :  { %552 = vmatpush3.bf16.msra.mxu0 %v597_v29 }
  0x5d   :  { %553 = vmatprep.subr.bf16.mxu0 %v721_v0 }
  0x60   :  { %554 = vmatpush3.bf16.msra.mxu0 %v598_v30 }
  0x61   :  { %555 = vmatprep.subr.bf16.mxu0 %v721_v0 }
  0x64   :  { %556 = vmatpush3.bf16.msra.mxu0 %v599_v31 }
  0x65   :  { %557 = vmatprep.subr.bf16.mxu0 %v721_v0 }
  0x68   :  { %558 = vmatpush3.bf16.msra.mxu0 %v600_v32 }
  0x69   :  { %559 = vmatprep.subr.bf16.mxu0 %v721_v0 }
  0x6c   :  { %560 = vmatpush3.bf16.msra.mxu0 %v601_v33 }
  0x6d   :  { %561 = vmatprep.subr.bf16.mxu0 %v721_v0 }
  0x70   :  { %562 = vmatpush3.bf16.msra.mxu0 %v602_v34 }
 0x113   :  { %v196_v20 = vpop.f32.mrf.mxu0 }
 0x114   :  { %v197_v24 = vadd.f32 %v452_v21, %v196_v20 }
 0x115   :  { %v525_v22 = vpop.f32.mrf.mxu0 }
 0x117   :  { %v199_v23 = vpop.f32.mrf.mxu0 }
 0x118   :  { %v200_v25 = vadd.f32 %v452_v21, %v199_v23 }
 0x119   :  { %v526_v26 = vpop.f32.mrf.mxu0 }
 0x11a   :  { %v203_v27 = vpack.c.bf16 %v200_v25, %v197_v24 }
 0x11c   :  { %603 = vtanh.bf16 %v203_v27 }
 0x12a   :  { %v604_v28 = vpop.eup %603 }
 0x12b   :  { %544 = vmatmul.mubr.bf16.vlgmr.msra.gmra.mxu1 %v604_v28 }
 0x1eb   :  { %v310_v35 = vpop.f32.mrf.mxu1 }
 0x1ec   :  { %v311_v39 = vadd.f32 %v462_v36, %v310_v35 }
 0x1ed   :  { %v545_v37 = vpop.f32.mrf.mxu1 }
 0x1ef   :  { %v313_v38 = vpop.f32.mrf.mxu1 }
 0x1f0   :  { %v314_v40 = vadd.f32 %v462_v36, %v313_v38 }
 0x1f1   :  { %v546_v41 = vpop.f32.mrf.mxu1 }
 0x1f2   :  { %v317_v42 = vpack.c.bf16 %v314_v40, %v311_v39 }
 0x1f4   :  { %605 = vtanh.bf16 %v317_v42 }
 0x202   :  { %v606_v43 = vpop.eup %605 }
 0x203   :  { %564 = vmatmul.mubr.bf16.vlgmr.msra.gmra.mxu0 %v606_v43 }
 0x2c3   :  { %v424_v45 = vpop.f32.mrf.mxu0 }
 0x2c4   :  { %v425_v46 = vadd.f32 %v471_v44, %v424_v45 }
 0x2c5   :  { %v565_v47 = vpop.f32.mrf.mxu0 }
 0x2c6   :  { %431 = vst [vmem:[#allocation10] sm:$0xff] %v425_v46 }
 0x2c7   :  { %v427_v48 = vpop.f32.mrf.mxu0 }
 0x2c8   :  { %v428_v49 = vadd.f32 %v471_v44, %v427_v48 }
 0x2c9   :  { %v566_v50 = vpop.f32.mrf.mxu0 }
 0x2ca   :  { %432 = vst [vmem:[#allocation10 + $0x8] sm:$0xff] %v428_v49 }
 0x2cb   :  { %698 = shalt.err (!%p695_p10)
}
 0x2cc   :  { %s724_s26 = smov 128   ;;  %s725_s6 = smov 8  }
 0x2cd   :  { %444 = dma.vmem_to_hbm [thread:$0]  %s439_s25, 256, %s839_s7, [#allocation4], %s724_s26, %s724_s26, %s725_s6  }
 0x2ce   :  { %713 = dma.done.wait [#allocation4], 256  }
 0x2cf   :  { %714 = vsyncadd [#allocation4], 4294967040 }
 0x2d0   :  { %448 = vsyncpa [#allocation3], 1 }
 0x2d1   :  { %449 = vsyncpa [#allocation6], 1 }
 0x2d2   :  { %450 = vsyncpa [#allocation9], 1 }
 0x2d3   :  { %451 = vsyncpa [#allocation4], 1 }

// kernel: tpu_custom_call.1
= control target key start
LH: loop header
LB: loop body
LE: loop exit
PB: predicated region body
PF: predicated region fallthrough
CT: control target
= control target key end

     0   :  { %12 = vsyncpa [#allocation3], 0  ;;  %s832_s0 = inlined_call_operand.hbm [shape: bf16[16,128], index: 0, kind: input, shape index: {}]   ;;  %s833_s1 = inlined_call_operand.hbm [shape: bf16[128,128], index: 1, kind: input, shape index: {}]   ;;  %s834_s2 = inlined_call_operand.vmem [shape: f32[1,128], index: 2, kind: input, shape index: {}]   ;;  %s835_s3 = inlined_call_operand.hbm [shape: bf16[128,128], index: 3, kind: input, shape index: {}]   ;;  %s836_s4 = inlined_call_operand.vmem [shape: f32[1,128], index: 4, kind: input, shape index: {}]   ;;  %s837_s5 = inlined_call_operand.hbm [shape: bf16[128,128], index: 5, kind: input, shape index: {}]   ;;  %s838_s6 = inlined_call_operand.vmem [shape: f32[1,128], index: 6, kind: input, shape index: {}]   ;;  %s839_s7 = inlined_call_operand.hbm [shape: f32[16,128], index: 7, kind: output, shape index: {}]  }
   0x1   :  { %13 = vsyncpa [#allocation6], 0 }
   0x2   :  { %14 = vsyncpa [#allocation9], 0 }
   0x3   :  { %15 = vsyncpa [#allocation4], 0  ;;  %s715_s24 = smov [#allocation5]   ;;  %s716_s26 = smov [#allocation2]  }
   0x4   :  { %s33_s25 = sshll.u32 %s715_s24, 4  ;;  %s21_s27 = sshll.u32 %s716_s26, 4  ;;  %s34_s25 = int_to_ptr.vmem [resolvable:$true] %s33_s25  ;;  %s22_s27 = int_to_ptr.vmem [resolvable:$true] %s21_s27 }
   0x5   :  { %s615_s28 = scalar_lea.vmem %s34_s25, 1024  ;;  %p620_p1 = scmp.lt.s32.totalorder %s34_s25, %s34_s25 }
   0x6   :  { %p616_p0 = scmp.ne.s32.totalorder %s34_s25, %s615_s28  ;;  %p621_p2 = scmp.lt.s32.totalorder %s615_s28, %s615_s28 }
   0x8   :  { %p622_p3 = por %p621_p2, %p620_p1 }
   0xa   :  { %p623_p4 = pnand %p622_p3, %p616_p0 }
   0xc   :  { %626 = shalt.err (!%p623_p4)
}
   0xd   :  { %s717_s29 = smov 64   ;;  %s718_s30 = smov 4  }
   0xe   :  { %39 = dma.hbm_to_vmem [thread:$0]  %s833_s1, 1024, %s34_s25, [#allocation6], %s717_s29, %s717_s29, %s718_s30  }
   0xf   :  { %s635_s10 = scalar_lea.vmem %s22_s27, 128  ;;  %p640_p6 = scmp.lt.s32.totalorder %s22_s27, %s22_s27 }
  0x10   :  { %p636_p5 = scmp.ne.s32.totalorder %s22_s27, %s635_s10  ;;  %p641_p7 = scmp.lt.s32.totalorder %s635_s10, %s635_s10 }
  0x12   :  { %p642_p8 = por %p641_p7, %p640_p6 }
  0x14   :  { %p643_p9 = pnand %p642_p8, %p636_p5 }
  0x16   :  { %646 = shalt.err (!%p643_p9)
}
  0x17   :  { %27 = dma.hbm_to_vmem [thread:$0]  %s832_s0, 128, %s22_s27, [#allocation3], %s717_s29, %s717_s29, %s718_s30  }
  0x18   :  { %s719_s13 = smov [#allocation7]   ;;  %s720_s15 = smov [#allocation8]  }
  0x19   :  { %s47_s14 = sshll.u32 %s719_s13, 4  ;;  %s61_s16 = sshll.u32 %s720_s15, 4  ;;  %s48_s14 = int_to_ptr.vmem [resolvable:$true] %s47_s14  ;;  %s62_s16 = int_to_ptr.vmem [resolvable:$true] %s61_s16 }
  0x1a   :  { %s655_s1 = scalar_lea.vmem %s48_s14, 1024  ;;  %p660_p11 = scmp.lt.s32.totalorder %s48_s14, %s48_s14 }
  0x1b   :  { %p656_p10 = scmp.ne.s32.totalorder %s48_s14, %s655_s1  ;;  %p661_p12 = scmp.lt.s32.totalorder %s655_s1, %s655_s1 }
  0x1d   :  { %p662_p13 = por %p661_p12, %p660_p11 }
  0x1f   :  { %p663_p0 = pnand %p662_p13, %p656_p10 }
  0x21   :  { %666 = shalt.err (!%p663_p0)
}
  0x22   :  { %53 = dma.hbm_to_vmem [thread:$0]  %s835_s3, 1024, %s48_s14, [#allocation6], %s717_s29, %s717_s29, %s718_s30  }
  0x23   :  { %s675_s0 = scalar_lea.vmem %s62_s16, 1024  ;;  %p680_p2 = scmp.lt.s32.totalorder %s62_s16, %s62_s16 }
  0x24   :  { %p676_p1 = scmp.ne.s32.totalorder %s62_s16, %s675_s0  ;;  %p681_p3 = scmp.lt.s32.totalorder %s675_s0, %s675_s0 }
  0x26   :  { %p682_p4 = por %p681_p3, %p680_p2 }
  0x28   :  { %p683_p5 = pnand %p682_p4, %p676_p1 }
  0x2a   :  { %686 = shalt.err (!%p683_p5)
}
  0x2b   :  { %67 = dma.hbm_to_vmem [thread:$0]  %s837_s5, 1024, %s62_s16, [#allocation9], %s717_s29, %s717_s29, %s718_s30  }
  0x2c   :  { %707 = dma.done.wait [#allocation3], 128  }
  0x2d   :  { %708 = vsyncadd [#allocation3], 4294967168 }
  0x2e   :  { %709 = dma.done.wait [#allocation6], 2048  }
  0x2f   :  { %710 = vsyncadd [#allocation6], 4294965248 }
  0x30   :  { %711 = dma.done.wait [#allocation9], 1024  }
  0x31   :  { %712 = vsyncadd [#allocation9], 4294966272  ;;  %v721_v0 = vmov 0.0   ;;  %vm722_vm0 = vmmov 0   ;;  %v578_v1 = vld [vmem:[#allocation5 + $0x38] sm:$0xff]   ;;  %v579_v2 = vld [vmem:[#allocation5 + $0x30] sm:$0xff]  }
  0x32   :  { %507 = vmatprep.subr.bf16.mxu0 %v721_v0  ;;  %523 = vmatprep.mubr.msk.bf16.mxu0 %vm722_vm0, %v721_v0  ;;  %v580_v3 = vld [vmem:[#allocation5 + $0x28] sm:$0xff]   ;;  %v587_v4 = vld [vmem:[#allocation7 + $0x38] sm:$0xff]   ;;  %v581_v5 = vld [vmem:[#allocation5 + $0x20] sm:$0xff]   ;;  %s723_s24 = smov [#allocation10]  }
  0x33   :  { %527 = vmatprep.subr.bf16.mxu1 %v721_v0  ;;  %543 = vmatprep.mubr.msk.bf16.mxu1 %vm722_vm0, %v721_v0  ;;  %v588_v6 = vld [vmem:[#allocation7 + $0x30] sm:$0xff]   ;;  %v582_v7 = vld [vmem:[#allocation5 + $0x18] sm:$0xff]   ;;  %v584_v9 = vld [vmem:[#allocation5 + $0x8] sm:$0xff]   ;;  %s438_s25 = sshll.u32 %s723_s24, 4  ;;  %s439_s25 = int_to_ptr.vmem [resolvable:$true] %s438_s25 }
  0x34   :  { %508 = vmatpush3.bf16.msra.mxu0 %v578_v1  ;;  %528 = vmatpush3.bf16.msra.mxu1 %v587_v4  ;;  %v583_v8 = vld [vmem:[#allocation5 + $0x10] sm:$0xff]   ;;  %v585_v10 = vld [vmem:[#allocation5] sm:$0xff]   ;;  %v586_v11 = vld [vmem:[#allocation2] sm:$0xff]   ;;  %p692_p7 = scmp.lt.s32.totalorder %s439_s25, %s439_s25 }
  0x35   :  { %509 = vmatprep.subr.bf16.mxu0 %v721_v0  ;;  %529 = vmatprep.subr.bf16.mxu1 %v721_v0  ;;  %v589_v12 = vld [vmem:[#allocation7 + $0x28] sm:$0xff]   ;;  %v590_v13 = vld [vmem:[#allocation7 + $0x20] sm:$0xff]   ;;  %v591_v14 = vld [vmem:[#allocation7 + $0x18] sm:$0xff]  }
  0x36   :  { %v592_v15 = vld [vmem:[#allocation7 + $0x10] sm:$0xff]   ;;  %v593_v16 = vld [vmem:[#allocation7 + $0x8] sm:$0xff]   ;;  %v594_v17 = vld [vmem:[#allocation7] sm:$0xff]  }
  0x37   :  { %v595_v18 = vld [vmem:[#allocation8 + $0x38] sm:$0xff]   ;;  %v596_v19 = vld [vmem:[#allocation8 + $0x30] sm:$0xff]   ;;  %v597_v29 = vld [vmem:[#allocation8 + $0x28] sm:$0xff]  }
  0x38   :  { %510 = vmatpush3.bf16.msra.mxu0 %v579_v2  ;;  %530 = vmatpush3.bf16.msra.mxu1 %v588_v6  ;;  %v452_v21 = vld [vmem:[%s834_s2] ss:$0 sm:$0xff]  ;;  %v598_v30 = vld [vmem:[#allocation8 + $0x20] sm:$0xff]   ;;  %v600_v32 = vld [vmem:[#allocation8 + $0x10] sm:$0xff]  }
  0x39   :  { %511 = vmatprep.subr.bf16.mxu0 %v721_v0  ;;  %531 = vmatprep.subr.bf16.mxu1 %v721_v0  ;;  %v599_v31 = vld [vmem:[#allocation8 + $0x18] sm:$0xff]   ;;  %v601_v33 = vld [vmem:[#allocation8 + $0x8] sm:$0xff]   ;;  %v602_v34 = vld [vmem:[#allocation8] sm:$0xff]  }
  0x3a   :  { %v462_v36 = vld [vmem:[%s836_s4] ss:$0 sm:$0xff]  ;;  %s687_s4 = scalar_lea.vmem %s439_s25, 256 }
  0x3b   :  { %v471_v44 = vld [vmem:[%s838_s6] ss:$0 sm:$0xff]  ;;  %p688_p6 = scmp.ne.s32.totalorder %s439_s25, %s687_s4  ;;  %p693_p8 = scmp.lt.s32.totalorder %s687_s4, %s687_s4 }
  0x3c   :  { %512 = vmatpush3.bf16.msra.mxu0 %v580_v3  ;;  %532 = vmatpush3.bf16.msra.mxu1 %v589_v12 }
  0x3d   :  { %513 = vmatprep.subr.bf16.mxu0 %v721_v0  ;;  %533 = vmatprep.subr.bf16.mxu1 %v721_v0  ;;  %p694_p9 = por %p693_p8, %p692_p7 }
  0x3f   :  { %p695_p10 = pnand %p694_p9, %p688_p6 }
  0x40   :  { %514 = vmatpush3.bf16.msra.mxu0 %v581_v5  ;;  %534 = vmatpush3.bf16.msra.mxu1 %v590_v13 }
  0x41   :  { %515 = vmatprep.subr.bf16.mxu0 %v721_v0  ;;  %535 = vmatprep.subr.bf16.mxu1 %v721_v0 }
  0x44   :  { %516 = vmatpush3.bf16.msra.mxu0 %v582_v7  ;;  %536 = vmatpush3.bf16.msra.mxu1 %v591_v14 }
  0x45   :  { %517 = vmatprep.subr.bf16.mxu0 %v721_v0  ;;  %537 = vmatprep.subr.bf16.mxu1 %v721_v0 }
  0x48   :  { %518 = vmatpush3.bf16.msra.mxu0 %v583_v8  ;;  %538 = vmatpush3.bf16.msra.mxu1 %v592_v15 }
  0x49   :  { %519 = vmatprep.subr.bf16.mxu0 %v721_v0  ;;  %539 = vmatprep.subr.bf16.mxu1 %v721_v0 }
  0x4c   :  { %520 = vmatpush3.bf16.msra.mxu0 %v584_v9  ;;  %540 = vmatpush3.bf16.msra.mxu1 %v593_v16 }
  0x4d   :  { %521 = vmatprep.subr.bf16.mxu0 %v721_v0  ;;  %541 = vmatprep.subr.bf16.mxu1 %v721_v0 }
  0x50   :  { %522 = vmatpush3.bf16.msra.mxu0 %v585_v10  ;;  %542 = vmatpush3.bf16.msra.mxu1 %v594_v17 }
  0x51   :  { %547 = vmatprep.subr.bf16.mxu0 %v721_v0 }
  0x53   :  { %524 = vmatmul.mubr.bf16.vlgmr.msra.gmra.mxu0 %v586_v11 }
  0x54   :  { %563 = vmatprep.mubr.msk.bf16.mxu0 %vm722_vm0, %v721_v0  ;;  %548 = vmatpush3.bf16.msra.mxu0 %v595_v18 }
  0x55   :  { %549 = vmatprep.subr.bf16.mxu0 %v721_v0 }
  0x58   :  { %550 = vmatpush3.bf16.msra.mxu0 %v596_v19 }
  0x59   :  { %551 = vmatprep.subr.bf16.mxu0 %v721_v0 }
  0x5c   :  { %552 = vmatpush3.bf16.msra.mxu0 %v597_v29 }
  0x5d   :  { %553 = vmatprep.subr.bf16.mxu0 %v721_v0 }
  0x60   :  { %554 = vmatpush3.bf16.msra.mxu0 %v598_v30 }
  0x61   :  { %555 = vmatprep.subr.bf16.mxu0 %v721_v0 }
  0x64   :  { %556 = vmatpush3.bf16.msra.mxu0 %v599_v31 }
  0x65   :  { %557 = vmatprep.subr.bf16.mxu0 %v721_v0 }
  0x68   :  { %558 = vmatpush3.bf16.msra.mxu0 %v600_v32 }
  0x69   :  { %559 = vmatprep.subr.bf16.mxu0 %v721_v0 }
  0x6c   :  { %560 = vmatpush3.bf16.msra.mxu0 %v601_v33 }
  0x6d   :  { %561 = vmatprep.subr.bf16.mxu0 %v721_v0 }
  0x70   :  { %562 = vmatpush3.bf16.msra.mxu0 %v602_v34 }
 0x113   :  { %v196_v20 = vpop.f32.mrf.mxu0 }
 0x114   :  { %v197_v24 = vadd.f32 %v452_v21, %v196_v20 }
 0x115   :  { %v525_v22 = vpop.f32.mrf.mxu0 }
 0x117   :  { %v199_v23 = vpop.f32.mrf.mxu0 }
 0x118   :  { %v200_v25 = vadd.f32 %v452_v21, %v199_v23 }
 0x119   :  { %v526_v26 = vpop.f32.mrf.mxu0 }
 0x11a   :  { %v203_v27 = vpack.c.bf16 %v200_v25, %v197_v24 }
 0x11c   :  { %603 = vtanh.bf16 %v203_v27 }
 0x12a   :  { %v604_v28 = vpop.eup %603 }
 0x12b   :  { %544 = vmatmul.mubr.bf16.vlgmr.msra.gmra.mxu1 %v604_v28 }
 0x1eb   :  { %v310_v35 = vpop.f32.mrf.mxu1 }
 0x1ec   :  { %v311_v39 = vadd.f32 %v462_v36, %v310_v35 }
 0x1ed   :  { %v545_v37 = vpop.f32.mrf.mxu1 }
 0x1ef   :  { %v313_v38 = vpop.f32.mrf.mxu1 }
 0x1f0   :  { %v314_v40 = vadd.f32 %v462_v36, %v313_v38 }
 0x1f1   :  { %v546_v41 = vpop.f32.mrf.mxu1 }
 0x1f2   :  { %v317_v42 = vpack.c.bf16 %v314_v40, %v311_v39 }
 0x1f4   :  { %605 = vtanh.bf16 %v317_v42 }
 0x202   :  { %v606_v43 = vpop.eup %605 }
 0x203   :  { %564 = vmatmul.mubr.bf16.vlgmr.msra.gmra.mxu0 %v606_v43 }
 0x2c3   :  { %v424_v45 = vpop.f32.mrf.mxu0 }
 0x2c4   :  { %v425_v46 = vadd.f32 %v471_v44, %v424_v45 }
 0x2c5   :  { %v565_v47 = vpop.f32.mrf.mxu0 }
 0x2c6   :  { %431 = vst [vmem:[#allocation10] sm:$0xff] %v425_v46 }
 0x2c7   :  { %v427_v48 = vpop.f32.mrf.mxu0 }
 0x2c8   :  { %v428_v49 = vadd.f32 %v471_v44, %v427_v48 }
 0x2c9   :  { %v566_v50 = vpop.f32.mrf.mxu0 }
 0x2ca   :  { %432 = vst [vmem:[#allocation10 + $0x8] sm:$0xff] %v428_v49 }
 0x2cb   :  { %698 = shalt.err (!%p695_p10)
}
 0x2cc   :  { %s724_s26 = smov 128   ;;  %s725_s6 = smov 8  }
 0x2cd   :  { %444 = dma.vmem_to_hbm [thread:$0]  %s439_s25, 256, %s839_s7, [#allocation4], %s724_s26, %s724_s26, %s725_s6  }
 0x2ce   :  { %713 = dma.done.wait [#allocation4], 256  }
 0x2cf   :  { %714 = vsyncadd [#allocation4], 4294967040 }
 0x2d0   :  { %448 = vsyncpa [#allocation3], 1 }
 0x2d1   :  { %449 = vsyncpa [#allocation6], 1 }
 0x2d2   :  { %450 = vsyncpa [#allocation9], 1 }
 0x2d3   :  { %451 = vsyncpa [#allocation4], 1 }

</bundles_post_ra>
